<compile_context>
chip_gen: v7x
topology: tpu7x:2x2x1
jax: 0.10.0
libtpu: 0.0.40
codegen_flags: <defaults>
</compile_context>

<pallas_src>
import functools

import jax
import jax.numpy as jnp
from jax.experimental import pallas as pl
from jax.experimental.pallas import tpu as pltpu


def _gated_pool_kernel(patch_ref, w_ref, out_ref, *, kk, c):
    """patch_ref: (1, KK*C, TS)   w_ref: (C_out, KK*C)   out_ref: (1, C_out, TS)."""
    p = patch_ref[0]                                     # (KK*C, TS), native dtype

    # conv2d(x, mask, stride) for this tile as one MXU matmul (contraction KK*C).
    conv = jnp.dot(w_ref[...], p, preferred_element_type=jnp.float32)   # (C_out, TS)
    alpha = jax.nn.sigmoid(conv)                         # EUP

    # max / avg pooling over the k*k window: KK static sublane slices of the same
    # resident tile, pure VPU elementwise (free filler under the DMA).
    sl0 = p[0:c, :]
    mx = sl0
    sm = sl0.astype(jnp.float32)
    for j in range(1, kk):                               # static, KK is tiny
        sl = p[j * c:(j + 1) * c, :]
        mx = jnp.maximum(mx, sl)
        sm = sm + sl.astype(jnp.float32)
    av = sm * (1.0 / kk)

    out = alpha * mx.astype(jnp.float32) + (1.0 - alpha) * av
    out_ref[0] = out.astype(out_ref.dtype)


def gated_pool_c(x, mask, *, kernel_size, stride, padding=0, dilation=1, tile_s=512):
    """x: (B, C, H, W) NCHW.  mask: (C_out, C_in, k, k) (F.conv2d convention).

    GatedPool_c sets out_channel == in_channels, which the blend requires.
    """
    # TODO(synk): general stride != kernel_size / padding > 0 / dilation > 1 needs an
    # overlapping-patch gather; this covers the standard pooling configuration.
    assert stride == kernel_size and padding == 0 and dilation == 1
    B, C, H, W = x.shape
    k = kernel_size
    OH, OW = H // k, W // k
    KK = k * k
    S = OH * OW
    C_out = mask.shape[0]          # F.conv2d treats dim 0 of the weight as C_out
    assert mask.shape == (C_out, C, k, k) and C_out == C

    # ---- glue: non-overlapping patch extraction, spatial axis last (lanes) ----
    # (B,C,H,W) -> (B,C,OH,k,OW,k) -> (B, k, k, C, OH, OW) -> (B, KK*C, OH*OW)
    # TODO(synk): this is still one HBM transpose pass over x; folding the gather
    # into BlockSpec index_maps over raw NCHW needs strided lane slices and is
    # left out of this version.
    patches = x.reshape(B, C, OH, k, OW, k).transpose(0, 3, 5, 1, 2, 4)
    patches = patches.reshape(B, KK * C, S)

    # ---- glue: weight flattened once to (C_out, KK*C), same (jh, jw, c) order ----
    w2 = mask.transpose(0, 2, 3, 1).reshape(C_out, KK * C)

    # ---- spatial tiling: lane-dense tiles, cdiv grid + padded tail ----
    if S <= tile_s:
        ts = S                                  # single spatial block (== full dim, legal)
        n_s = 1
        S_pad = S
    else:
        ts = max(128, (tile_s // 128) * 128)    # lane-aligned tile
        n_s = -(-S // ts)
        S_pad = n_s * ts
        if S_pad != S:
            patches = jnp.pad(patches, ((0, 0), (0, 0), (0, S_pad - S)))

    # Explicit scoped-VMEM budget: double-buffered input/output blocks + weight
    # + f32 intermediates, clamped to stay inside v7x's 64 MiB physical VMEM.
    itemsize = jnp.dtype(x.dtype).itemsize
    est = (2 * KK * C * ts + 2 * C_out * ts) * itemsize \
        + 2 * C_out * KK * C * jnp.dtype(mask.dtype).itemsize \
        + 8 * C * ts * 4
    vmem_limit = int(max(32 * 1024 * 1024, min(2 * est, 64 * 1024 * 1024)))

    kernel = functools.partial(_gated_pool_kernel, kk=KK, c=C)

    out = pl.pallas_call(
        kernel,
        out_shape=jax.ShapeDtypeStruct((B, C_out, S_pad), x.dtype),
        grid_spec=pltpu.PrefetchScalarGridSpec(
            num_scalar_prefetch=0,
            grid=(B, n_s),
            in_specs=[
                pl.BlockSpec((1, KK * C, ts), lambda b, i: (b, 0, i)),
                pl.BlockSpec((C_out, KK * C), lambda b, i: (0, 0)),   # constant -> no re-DMA
            ],
            out_specs=pl.BlockSpec((1, C_out, ts), lambda b, i: (b, 0, i)),
        ),
        compiler_params=pltpu.CompilerParams(
            dimension_semantics=("parallel", "parallel"),
            vmem_limit_bytes=vmem_limit,
        ),
    )(patches, w2)

    if S_pad != S:
        out = out[:, :, :S]
    # Output is already channel-major per batch: a free reshape gives NCHW.
    return out.reshape(B, C_out, OH, OW)


def _reference(x, mask, k):
    """Pure-JAX reference with identical semantics (for validation)."""
    B, C, H, W = x.shape
    OH, OW = H // k, W // k
    patches = x.reshape(B, C, OH, k, OW, k).transpose(0, 2, 4, 1, 3, 5)  # (B,OH,OW,C,k,k)
    conv = jnp.einsum("bhwcij,dcij->bdhw", patches, mask)
    alpha = jax.nn.sigmoid(conv)
    mx = jnp.max(patches, axis=(4, 5)).transpose(0, 3, 1, 2)
    av = jnp.mean(patches, axis=(4, 5)).transpose(0, 3, 1, 2)
    return alpha * mx + (1.0 - alpha) * av


if __name__ == "__main__":
    key = jax.random.PRNGKey(0)
    kx, km = jax.random.split(key)

    B, C, H, W = 2, 4, 16, 16
    kernel_size, stride = 2, 2

    x = jax.random.normal(kx, (B, C, H, W), dtype=jnp.float32)
    # nn.Parameter(torch.randn(in_channels, out_channel, k, k)); conv2d reads dim 0
    # as the output channel and in_channels == out_channel in this module.
    mask = jax.random.normal(km, (C, C, kernel_size, kernel_size), dtype=jnp.float32)

    fn = jax.jit(functools.partial(
        gated_pool_c, kernel_size=kernel_size, stride=stride, padding=0, dilation=1))
    out = fn(x, mask)
    jax.block_until_ready(out)

    ref = _reference(x, mask, kernel_size)
    assert out.shape == (B, C, H // stride, W // stride)
    assert jnp.allclose(out, ref, atol=1e-5, rtol=1e-5)

    print("KERNEL_OK")
</pallas_src>

<mosaic_0001>
module attributes {stable_mosaic.version = 11 : i64} {
  func.func @_gated_pool_kernel(%arg0: i32, %arg1: i32, %arg2: memref<1x16x64xf32, #tpu.memory_space<vmem>>, %arg3: memref<4x16xf32, #tpu.memory_space<vmem>>, %arg4: memref<1x4x64xf32, #tpu.memory_space<vmem>>) attributes {dimension_semantics = [#tpu.dimension_semantics<parallel>, #tpu.dimension_semantics<parallel>], iteration_bounds = array<i64: 2, 1>, scalar_prefetch = 0 : i64, scratch_operands = 0 : i64, tpu.core_type = #tpu.core_type<tc>, window_params = [{transform_indices = @transform_0, window_bounds = array<i64: 1, 16, 64>}, {pipeline_mode = #tpu.pipeline_mode<synchronous>, transform_indices = @transform_1, window_bounds = array<i64: 4, 16>}, {transform_indices = @transform_2, window_bounds = array<i64: 1, 4, 64>}]} {
    %c0 = arith.constant 0 : index
    %c0_0 = arith.constant 0 : index
    %c0_1 = arith.constant 0 : index
    %0 = vector.load %arg2[%c0, %c0_0, %c0_1] : memref<1x16x64xf32, #tpu.memory_space<vmem>>, vector<1x16x64xf32>
    %1 = vector.shape_cast %0 : vector<1x16x64xf32> to vector<16x64xf32>
    %c0_2 = arith.constant 0 : index
    %c0_3 = arith.constant 0 : index
    %2 = vector.load %arg3[%c0_2, %c0_3] : memref<4x16xf32, #tpu.memory_space<vmem>>, vector<4x16xf32>
    %cst = arith.constant dense<0.000000e+00> : vector<4x64xf32>
    %3 = tpu.matmul %2, %1, %cst {dimension_numbers = #tpu.dot_dimension_numbers<[1], [0], [0], [1], [0, 0, 1, 1], [], []>} : vector<4x16xf32>, vector<16x64xf32>, vector<4x64xf32> -> vector<4x64xf32>
    %4 = arith.negf %3 : vector<4x64xf32>
    %5 = math.exp %4 : vector<4x64xf32>
    %cst_4 = arith.constant 1.000000e+00 : f32
    %6 = vector.broadcast %cst_4 : f32 to vector<4x64xf32>
    %7 = arith.addf %6, %5 : vector<4x64xf32>
    %8 = arith.divf %6, %7 : vector<4x64xf32>
    %9 = vector.extract_strided_slice %1 {offsets = [0, 0], sizes = [4, 64], strides = [1, 1]} : vector<16x64xf32> to vector<4x64xf32>
    %10 = vector.extract_strided_slice %1 {offsets = [4, 0], sizes = [4, 64], strides = [1, 1]} : vector<16x64xf32> to vector<4x64xf32>
    %11 = arith.maximumf %9, %10 : vector<4x64xf32>
    %12 = arith.addf %9, %10 : vector<4x64xf32>
    %13 = vector.extract_strided_slice %1 {offsets = [8, 0], sizes = [4, 64], strides = [1, 1]} : vector<16x64xf32> to vector<4x64xf32>
    %14 = arith.maximumf %11, %13 : vector<4x64xf32>
    %15 = arith.addf %12, %13 : vector<4x64xf32>
    %16 = vector.extract_strided_slice %1 {offsets = [12, 0], sizes = [4, 64], strides = [1, 1]} : vector<16x64xf32> to vector<4x64xf32>
    %17 = arith.maximumf %14, %16 : vector<4x64xf32>
    %18 = arith.addf %15, %16 : vector<4x64xf32>
    %cst_5 = arith.constant 2.500000e-01 : f32
    %19 = vector.broadcast %cst_5 : f32 to vector<4x64xf32>
    %20 = arith.mulf %18, %19 : vector<4x64xf32>
    %21 = arith.mulf %8, %17 : vector<4x64xf32>
    %cst_6 = arith.constant 1.000000e+00 : f32
    %22 = vector.broadcast %cst_6 : f32 to vector<4x64xf32>
    %23 = arith.subf %22, %8 : vector<4x64xf32>
    %24 = arith.mulf %23, %20 : vector<4x64xf32>
    %25 = arith.addf %21, %24 : vector<4x64xf32>
    %c0_7 = arith.constant 0 : index
    %c0_8 = arith.constant 0 : index
    %c0_9 = arith.constant 0 : index
    %26 = vector.load %arg4[%c0_7, %c0_8, %c0_9] : memref<1x4x64xf32, #tpu.memory_space<vmem>>, vector<1x4x64xf32>
    %27 = vector.shape_cast %26 : vector<1x4x64xf32> to vector<4x64xf32>
    %28 = vector.shape_cast %25 : vector<4x64xf32> to vector<1x4x64xf32>
    tpu.vector_store %arg4[%c0_7, %c0_8, %c0_9], %28 {strides = array<i32>} : memref<1x4x64xf32, #tpu.memory_space<vmem>>, vector<1x4x64xf32>,
    return
  }
  func.func @transform_0(%arg0: i32, %arg1: i32) -> (i32, i32, i32) {
    %c0_i32 = arith.constant 0 : i32
    %c0_i32_0 = arith.constant 0 : i32
    return %arg0, %c0_i32, %arg1 : i32, i32, i32
  }
  func.func @transform_1(%arg0: i32, %arg1: i32) -> (i32, i32) {
    %c0_i32 = arith.constant 0 : i32
    %c0_i32_0 = arith.constant 0 : i32
    %c0_i32_1 = arith.constant 0 : i32
    return %c0_i32, %c0_i32_0 : i32, i32
  }
  func.func @transform_2(%arg0: i32, %arg1: i32) -> (i32, i32, i32) {
    %c0_i32 = arith.constant 0 : i32
    %c0_i32_0 = arith.constant 0 : i32
    return %arg0, %c0_i32, %arg1 : i32, i32, i32
  }
}

</mosaic_0001>

<bundles_post_ra>
// kernel: gated_pool_c.1
= control target key start
LH: loop header
LB: loop body
LE: loop exit
PB: predicated region body
PF: predicated region fallthrough
CT: control target
= control target key end

     0   :  { %s451_s9 = smov 0   ;;  %s453_s10 = smov 0   ;;  %s491_s0 = inlined_call_operand.vmem [shape: f32[2,16,64], index: 0, kind: input, shape index: {}]   ;;  %s492_s1 = inlined_call_operand.vmem [shape: f32[4,16], index: 1, kind: input, shape index: {}]   ;;  %s493_s2 = inlined_call_operand.vmem [shape: f32[2,4,64], index: 2, kind: output, shape index: {}]  }
   0x1   :  { %s455_s11 = smov 0  }
   0x2 LB: > { %s24_s12 = sadd.s32 1, %s427_s10  ;;  %p356_p0 = scmp.ge.s32.totalorder %s431_s11, 1  ;;  %s431_s11 = sphi %s455_s11, %s12_s11   ;;  %s427_s10 = sphi %s453_s10, %s495_s10   ;;  %s423_s9 = sphi %s451_s9, %s494_s9  }
   0x3   : > { %p26_p1 = scmp.ge.s32.totalorder %s24_s12, 2  ;;  %p131_p2 = scmp.lt.s32.totalorder %s431_s11, 3 }
   0x5   : > { %s497_s12 = smov (%p26_p1, %s24_s12), 0  ;;  %p132_p3 = pnand %p356_p0, %p131_p2 }
   0x6   : > { %p158_p4 = scmp.lt.s32.totalorder (!%p132_p3), %s423_s9, 1  ;;  %v433_v0 = vmov (!%p132_p3), 0.0|0.0   ;;  %vm434_vm0 = vmmov (!%p132_p3), 0   ;;  %v435_v1 = vmov (!%p132_p3), 0.0   ;;  %v175_v9 = vld [vmem:[%s492_s1] sm:$0xf] (!%p132_p3) }
   0x7   : > { %135 = sbr.rel (%p132_p3) target bundleno = 268 (0x10c), region = 28  ;;  %375 = vmatprep.subr.bf16.mxu0 (!%p132_p3), %v433_v0  ;;  %372 = vmatprep.mubr.msk.f32.mxu0 (!%p132_p3), %vm434_vm0, %v435_v1  ;;  %vm176_vm1 = vcmask (!%p132_p3), 130048   ;;  %vm273_vm2 = vcmask (!%p132_p3), 519168  }
   0xe   : > { %s499_s9 = smov (!%p158_p4, %s423_s9), 1 }
   0xf   : > { %s364_s13 = sshll.u32 %s499_s9, 4  ;;  %s359_s19 = sshll.u32 %s499_s9, 2 }
  0x10   : > { %s165_s16 = scalar_lea.vmem %s491_s0, %s364_s13  ;;  %s172_s22 = scalar_lea.vmem %s493_s2, %s359_s19 }
  0x11   : > { %v173_v2 = vld [vmem:[%s165_s16] sm:$0xff]  ;;  %v174_v3 = vld [vmem:[%s165_s16 + $0x8] sm:$0xff] }
  0x12   : > { %v376_v4 = vpack.c.bf16 %v174_v3, %v173_v2  ;;  %v257_v5 = vrot.slane %v173_v2, 4  ;;  %v264_v8 = vrot.slane %v174_v3, 4 }
  0x14   : > { %377 = vmatpush3.bf16.msra.mxu0 %v376_v4  ;;  %v259_v6 = vmax.f32 %v173_v2, %v257_v5  ;;  %v260_v7 = vadd.f32 %v257_v5, %v173_v2 }
  0x16   : > { %v261_v10 = vmax.f32 %v259_v6, %v174_v3  ;;  %v262_v11 = vadd.f32 %v260_v7, %v174_v3 }
  0x17   : > { %373 = vmatmul.mubr.msk.f32.vlgmr.msra.gmra.mrb[0].mxu0 %vm176_vm1, %v175_v9 }
  0x18   : > { %v266_v12 = vmax.f32 %v261_v10, %v264_v8  ;;  %v267_v13 = vadd.f32 %v264_v8, %v262_v11 }
  0x1a   : > { %v268_v19 = vmul.f32 0.25, %v267_v13 }
  0xea   : > { %v246_v14 = vpop.f32.mrb[0].mxu0 }
  0xeb   : > { %v361_v15 = vmul.f32 -1.442695, %v246_v14  ;;  %v374_v16 = vpop.f32.mrb[1].mxu0 }
  0xed   : > { %405 = vpow2.f32 %v361_v15 }
  0xf7   : > { %v406_v17 = vpop.eup %405 }
  0xf8   : > { %v253_v18 = vadd.f32 1.0, %v406_v17 }
  0xfa   : > { %407 = vrcp.f32 %v253_v18 }
 0x104   : > { %v408_v20 = vpop.eup %407 }
 0x105   : > { %v269_v21 = vmul.f32 %v408_v20, %v266_v12  ;;  %v270_v22 = vsub.f32 1.0, %v408_v20 }
 0x107   : > { %v271_v23 = vmul.f32 %v270_v22, %v268_v19 }
 0x109   : > { %v272_v24 = vadd.f32 %v271_v23, %v269_v21 }
 0x10b   : > { %274 = vst.msk [vmem:[%s172_s22] sm:$0xf] %vm273_vm2, %v272_v24 }
 0x10c PF: > { %s12_s11 = sadd.s32 1, %s431_s11   ;;  %s494_s9 = smov %s427_s10 }
 0x10d   : > { %p9_p5 = scmp.ge.s32.totalorder %s12_s11, 4   ;;  %s495_s10 = smov %s497_s12 }
 0x10f   :  { %11 = sbr.rel (!%p9_p5) target bundleno = 2 (0x2), region = 58 }

</bundles_post_ra>
